<compile_context>
chip_gen: v6e
topology: v6e:2x2x1
jax: 0.10.0
libtpu: 0.0.40
codegen_flags: <defaults>
</compile_context>

<pallas_src>
import math

import jax
import jax.numpy as jnp
from jax.experimental import pallas as pl
from jax.experimental.pallas import tpu as pltpu

_SQRT_2_OVER_PI = 0.7978845608028654  # hoisted constant


def _gelu_tanh(x):
    # tanh-approx GELU in f32 -> tanh runs on the EUP slot.
    return 0.5 * x * (1.0 + jnp.tanh(_SQRT_2_OVER_PI * (x + 0.044715 * x * x * x)))


def _round_up(v, m):
    return (v + m - 1) // m * m


# ----------------------------------------------------------------------------- kernel
def moe_expert_kernel(mask_ref, g_ref, x_ref, w1_ref, w2_ref, out_ref):
    """Grid = (token_tiles, num_experts); expert axis is the (arbitrary) reduction axis.

    mask_ref : SMEM (num_tiles, E) int32  — 1 iff any token in tile i routes to expert e
    g_ref    : (TM, 1)  f32   gate values for (tile i, expert e)
    x_ref    : (TM, Dp) bf16  token tile (resident across the expert axis)
    w1_ref   : (Dp, Hp) bf16  expert e input weights  (streamed, double-buffered)
    w2_ref   : (Hp, Dp) bf16  expert e output weights (streamed, double-buffered)
    out_ref  : (TM, Dp) f32   accumulator / output   (resident across the expert axis)
    """
    i = pl.program_id(0)
    e = pl.program_id(1)

    @pl.when(e == 0)
    def _init():
        out_ref[...] = jnp.zeros_like(out_ref)

    @pl.when(mask_ref[i, e] != 0)
    def _compute():
        h = jnp.dot(x_ref[...], w1_ref[...], preferred_element_type=jnp.float32)  # (TM, Hp) f32
        h = _gelu_tanh(h)                                                          # f32 on VPU/EUP
        o = jnp.dot(h.astype(jnp.bfloat16), w2_ref[...],
                    preferred_element_type=jnp.float32)                            # (TM, Dp) f32
        out_ref[...] += g_ref[...] * o                                             # f32 gate * f32 out


# ----------------------------------------------------------------------------- gating
def _top_k_gating(x, w_gate, k):
    """Eval-mode top-k gating (no noise, no sampling). Mirrors MoE.top_k_gating."""
    T, D = x.shape
    E = w_gate.shape[1]
    scale = 1.0 / math.sqrt(D)
    logits = jnp.dot(x, w_gate, precision=jax.lax.Precision.HIGHEST) * scale
    logits = jnp.nan_to_num(logits, nan=0.0, posinf=20.0, neginf=-20.0)
    probs = jax.nn.softmax(logits, axis=1)

    top_g, top_i = jax.lax.top_k(probs, k)
    top_g = top_g / (jnp.sum(top_g, axis=1, keepdims=True) + 1e-6)

    # Dense gate matrix (zeros.scatter in the torch code).
    gates = jnp.sum(jax.nn.one_hot(top_i, E, dtype=jnp.float32) * top_g[..., None], axis=1)
    return logits, probs, top_g, top_i, gates


def _aux_losses(logits, probs, gates, num_experts, cv_coef, aux_coef, z_coef):
    def l1_normalize(v):
        return v / jnp.maximum(jnp.sum(jnp.abs(v)), 1e-12)

    def cv_squared(v):
        if v.shape[0] == 1:
            return jnp.float32(0.0)
        return jnp.var(v, ddof=1) / (jnp.mean(v) ** 2 + 1e-10)

    expert_size = jnp.sum((gates > 0).astype(jnp.float32), axis=0)
    cv_l = cv_squared(l1_normalize(jnp.sum(gates, axis=0)))
    aux_l = jnp.sum(l1_normalize(jnp.sum(probs, axis=0)) * l1_normalize(expert_size)) * num_experts
    z_l = jnp.mean(jax.nn.logsumexp(logits, axis=1) ** 2)
    return cv_coef * cv_l + aux_coef * aux_l + z_coef * z_l


# ----------------------------------------------------------------------------- wrapper
def moe_forward(x4d, w_gate, w1, w2, k, *, block_tokens=512,
                cv_coef=0.0, aux_coef=0.0, z_coef=0.0):
    """MoE.forward (eval, need_merge=True, multiply_by_gates=True).

    x4d: (bsz, patches, length, input_size) f32
    w_gate: (input_size, num_experts)
    w1: (num_experts, input_size, head_size)   experts
    w2: (num_experts, head_size, input_size)   output_experts
    Returns (y, loss) with y: (bsz, patches, length, input_size) f32.

    block_tokens guidance: ~768-1024 on v6e, ~384-512 on v7x, ~256-512 on v5e.
    """
    bsz, patches, length, D = x4d.shape
    E, D_in, H = w1.shape
    assert D_in == D and w2.shape == (E, H, D)
    k = min(k, E)

    T = bsz * patches * length
    x = x4d.reshape(T, D).astype(jnp.float32)

    logits, probs, _, _, gates = _top_k_gating(x, w_gate, k)
    loss = _aux_losses(logits, probs, gates, E, cv_coef, aux_coef, z_coef)

    # --- TPU-friendly shapes (lane=128, sublane=8) ---
    Dp = _round_up(D, 128)
    Hp = _round_up(H, 128)
    TM = _round_up(min(block_tokens, T), 8)
    # Prefer >=2 token tiles so the "parallel" token axis can use both v7x TensorCores.
    if _round_up(T, TM) // TM < 2 and TM >= 16:
        TM = _round_up((TM + 1) // 2, 8)
    Tp = _round_up(T, TM)
    num_tiles = Tp // TM

    # bf16 activations/weights (MXU rate, half the HBM/VMEM bytes); f32 gates.
    x_p = jnp.zeros((Tp, Dp), jnp.bfloat16).at[:T, :D].set(x.astype(jnp.bfloat16))

    gates_pad = jnp.zeros((Tp, E), jnp.float32).at[:T, :].set(gates)
    g_t = jnp.swapaxes(gates_pad, 0, 1).reshape(E, Tp, 1)            # (E, Tp, 1)
    # Per-(tile, expert) "any routed token" mask -> SMEM scalar prefetch.
    tile_mask = (gates_pad.reshape(num_tiles, TM, E) > 0).any(axis=1).astype(jnp.int32)

    def _pad_experts(w, r, c):
        w = w.astype(jnp.bfloat16)
        pr, pc = r - w.shape[1], c - w.shape[2]
        if pr or pc:
            w = jnp.pad(w, ((0, 0), (0, pr), (0, pc)))
        return w

    w1_p = _pad_experts(w1, Dp, Hp)   # (E, Dp, Hp) bf16
    w2_p = _pad_experts(w2, Hp, Dp)   # (E, Hp, Dp) bf16

    # --- VMEM budget + scheduler hints ---
    vmem_est = (
        2 * TM * Dp * 2                 # x tile, bf16, double-buffered
        + 2 * TM * 128 * 4              # gate tile (lane-padded), double-buffered
        + 2 * (Dp * Hp + Hp * Dp) * 2   # one expert's W1+W2, bf16, double-buffered
        + 2 * TM * Dp * 4               # resident f32 output + writeback
        + TM * Hp * 4                   # f32 intermediate h
    )
    vmem_limit = max(32 << 20, min(int(vmem_est * 2), 64 << 20))

    cost = pl.CostEstimate(
        flops=4 * Tp * E * Dp * Hp,            # dense upper bound (mask skips ~1-k/E)
        transcendentals=Tp * E * Hp,
        bytes_accessed=(Tp * Dp * 2 + E * Tp * 4
                        + num_tiles * E * (Dp * Hp + Hp * Dp) * 2
                        + Tp * Dp * 4),
    )

    grid = (num_tiles, E)
    y_p = pl.pallas_call(
        moe_expert_kernel,
        out_shape=jax.ShapeDtypeStruct((Tp, Dp), jnp.float32),
        grid_spec=pltpu.PrefetchScalarGridSpec(
            num_scalar_prefetch=1,              # tile_mask -> SMEM
            grid=grid,
            in_specs=[
                pl.BlockSpec((None, TM, 1), lambda i, e, m: (e, i, 0)),   # gate column
                pl.BlockSpec((TM, Dp), lambda i, e, m: (i, 0)),           # x tile (resident over e)
                pl.BlockSpec((None, Dp, Hp), lambda i, e, m: (e, 0, 0)),  # W1[e] streamed
                pl.BlockSpec((None, Hp, Dp), lambda i, e, m: (e, 0, 0)),  # W2[e] streamed
            ],
            out_specs=pl.BlockSpec((TM, Dp), lambda i, e, m: (i, 0)),     # resident accumulator
        ),
        compiler_params=pltpu.CompilerParams(
            dimension_semantics=("parallel", "arbitrary"),
            vmem_limit_bytes=vmem_limit),
        cost_estimate=cost,
    )(tile_mask, g_t, x_p, w1_p, w2_p)

    y = y_p[:T, :D].reshape(bsz, patches, length, D)
    return y, loss


# ----------------------------------------------------------------------------- reference
def moe_reference(x4d, w_gate, w1, w2, k):
    """Pure-JAX reference mirroring the PyTorch sparse dispatch (eval, merged output),
    using the same bf16-in / f32-accumulate numerics as the kernel."""
    bsz, patches, length, D = x4d.shape
    x = x4d.reshape(-1, D).astype(jnp.float32)
    _, _, top_g, top_i, _ = _top_k_gating(x, w_gate, min(k, w1.shape[0]))

    xb = x.astype(jnp.bfloat16)
    w1_sel = w1[top_i].astype(jnp.bfloat16)  # (T, k, D, H)
    w2_sel = w2[top_i].astype(jnp.bfloat16)  # (T, k, H, D)
    h = jnp.einsum('td,tkdh->tkh', xb, w1_sel, preferred_element_type=jnp.float32)
    h = _gelu_tanh(h)
    o = jnp.einsum('tkh,tkhd->tkd', h.astype(jnp.bfloat16), w2_sel,
                   preferred_element_type=jnp.float32)
    y = jnp.sum(top_g[..., None] * o, axis=1)
    return y.reshape(bsz, patches, length, D)


# ----------------------------------------------------------------------------- main
if __name__ == "__main__":
    key = jax.random.PRNGKey(0)
    bsz, patches, length = 2, 4, 2
    input_size, head_size, num_experts, k = 32, 64, 4, 2

    kx, kg, k1, k2 = jax.random.split(key, 4)
    x = jax.random.normal(kx, (bsz, patches, length, input_size), jnp.float32)
    w_gate = jax.random.normal(kg, (input_size, num_experts), jnp.float32) * 0.01

    # ParallelExperts.reset_parameters init (uniform(-a, a), a = sqrt(3)*sqrt(2/(in+out)))
    a1 = math.sqrt(3.0) * math.sqrt(2.0 / float(input_size + head_size))
    w1 = jax.random.uniform(k1, (num_experts, input_size, head_size), jnp.float32, -a1, a1)
    a2 = math.sqrt(3.0) * math.sqrt(2.0 / float(head_size + input_size))
    w2 = jax.random.uniform(k2, (num_experts, head_size, input_size), jnp.float32, -a2, a2)

    # block_tokens=8 so the tiny test exercises a multi-step token grid (T=16 -> 2 tiles).
    y, loss = moe_forward(x, w_gate, w1, w2, k, block_tokens=8)
    y = jax.block_until_ready(y)

    y_ref = moe_reference(x, w_gate, w1, w2, k)
    assert y.shape == (bsz, patches, length, input_size)
    assert bool(jnp.isfinite(loss))
    assert jnp.allclose(y, y_ref, atol=1e-2, rtol=1e-2), "mismatch vs reference"
    print("KERNEL_OK")
</pallas_src>

<mosaic_0001>
module attributes {stable_mosaic.version = 11 : i64} {
  func.func @moe_expert_kernel(%arg0: i32, %arg1: i32, %arg2: memref<2x4xi32, #tpu.memory_space<smem>>, %arg3: memref<1x8x1xf32, #tpu.memory_space<vmem>>, %arg4: memref<8x128xbf16, #tpu.memory_space<vmem>>, %arg5: memref<1x128x128xbf16, #tpu.memory_space<vmem>>, %arg6: memref<1x128x128xbf16, #tpu.memory_space<vmem>>, %arg7: memref<8x128xf32, #tpu.memory_space<vmem>>) attributes {dimension_semantics = [#tpu.dimension_semantics<parallel>, #tpu.dimension_semantics<arbitrary>], iteration_bounds = array<i64: 2, 4>, scalar_prefetch = 1 : i64, scratch_operands = 0 : i64, tpu.core_type = #tpu.core_type<tc>, window_params = [{transform_indices = @transform_0, window_bounds = array<i64: 1, 8, 1>}, {transform_indices = @transform_1, window_bounds = array<i64: 8, 128>}, {transform_indices = @transform_2, window_bounds = array<i64: 1, 128, 128>}, {transform_indices = @transform_3, window_bounds = array<i64: 1, 128, 128>}, {transform_indices = @transform_4, window_bounds = array<i64: 8, 128>}]} {
    %c0_i32 = arith.constant 0 : i32
    %0 = arith.cmpi eq, %arg1, %c0_i32 : i32
    %1 = arith.extui %0 : i1 to i32
    %c0_i32_0 = arith.constant 0 : i32
    %2 = arith.cmpi ne, %1, %c0_i32_0 : i32
    scf.if %2 {
      %cst = arith.constant 0.000000e+00 : f32
      %9 = vector.broadcast %cst : f32 to vector<8x128xf32>
      %c0 = arith.constant 0 : index
      %c0_3 = arith.constant 0 : index
      %10 = vector.load %arg7[%c0, %c0_3] : memref<8x128xf32, #tpu.memory_space<vmem>>, vector<8x128xf32>
      tpu.vector_store %arg7[%c0, %c0_3], %9 {strides = array<i32>} : memref<8x128xf32, #tpu.memory_space<vmem>>, vector<8x128xf32>,
    } else {
    }
    %3 = arith.index_cast %arg0 : i32 to index
    %4 = arith.index_cast %arg1 : i32 to index
    %5 = memref.load %arg2[%3, %4] : memref<2x4xi32, #tpu.memory_space<smem>>
    %c0_i32_1 = arith.constant 0 : i32
    %6 = arith.cmpi ne, %5, %c0_i32_1 : i32
    %7 = arith.extui %6 : i1 to i32
    %c0_i32_2 = arith.constant 0 : i32
    %8 = arith.cmpi ne, %7, %c0_i32_2 : i32
    scf.if %8 {
      %c0 = arith.constant 0 : index
      %c0_3 = arith.constant 0 : index
      %9 = vector.load %arg4[%c0, %c0_3] : memref<8x128xbf16, #tpu.memory_space<vmem>>, vector<8x128xbf16>
      %c0_4 = arith.constant 0 : index
      %c0_5 = arith.constant 0 : index
      %c0_6 = arith.constant 0 : index
      %10 = vector.load %arg5[%c0_4, %c0_5, %c0_6] : memref<1x128x128xbf16, #tpu.memory_space<vmem>>, vector<1x128x128xbf16>
      %11 = vector.shape_cast %10 : vector<1x128x128xbf16> to vector<128x128xbf16>
      %cst = arith.constant dense<0.000000e+00> : vector<8x128xf32>
      %12 = tpu.matmul %9, %11, %cst {dimension_numbers = #tpu.dot_dimension_numbers<[1], [0], [0], [1], [0, 0, 1, 1], [], []>} : vector<8x128xbf16>, vector<128x128xbf16>, vector<8x128xf32> -> vector<8x128xf32>
      %cst_7 = arith.constant 5.000000e-01 : f32
      %13 = vector.broadcast %cst_7 : f32 to vector<8x128xf32>
      %14 = arith.mulf %13, %12 : vector<8x128xf32>
      %cst_8 = arith.constant 4.471500e-02 : f32
      %15 = vector.broadcast %cst_8 : f32 to vector<8x128xf32>
      %16 = arith.mulf %15, %12 : vector<8x128xf32>
      %17 = arith.mulf %16, %12 : vector<8x128xf32>
      %18 = arith.mulf %17, %12 : vector<8x128xf32>
      %19 = arith.addf %12, %18 : vector<8x128xf32>
      %cst_9 = arith.constant 0.797884583 : f32
      %20 = vector.broadcast %cst_9 : f32 to vector<8x128xf32>
      %21 = arith.mulf %20, %19 : vector<8x128xf32>
      %22 = math.tanh %21 : vector<8x128xf32>
      %cst_10 = arith.constant 1.000000e+00 : f32
      %23 = vector.broadcast %cst_10 : f32 to vector<8x128xf32>
      %24 = arith.addf %23, %22 : vector<8x128xf32>
      %25 = arith.mulf %14, %24 : vector<8x128xf32>
      %26 = arith.truncf %25 : vector<8x128xf32> to vector<8x128xbf16>
      %c0_11 = arith.constant 0 : index
      %c0_12 = arith.constant 0 : index
      %c0_13 = arith.constant 0 : index
      %27 = vector.load %arg6[%c0_11, %c0_12, %c0_13] : memref<1x128x128xbf16, #tpu.memory_space<vmem>>, vector<1x128x128xbf16>
      %28 = vector.shape_cast %27 : vector<1x128x128xbf16> to vector<128x128xbf16>
      %cst_14 = arith.constant dense<0.000000e+00> : vector<8x128xf32>
      %29 = tpu.matmul %26, %28, %cst_14 {dimension_numbers = #tpu.dot_dimension_numbers<[1], [0], [0], [1], [0, 0, 1, 1], [], []>} : vector<8x128xbf16>, vector<128x128xbf16>, vector<8x128xf32> -> vector<8x128xf32>
      %c0_15 = arith.constant 0 : index
      %c0_16 = arith.constant 0 : index
      %30 = vector.load %arg7[%c0_15, %c0_16] : memref<8x128xf32, #tpu.memory_space<vmem>>, vector<8x128xf32>
      %c0_17 = arith.constant 0 : index
      %c0_18 = arith.constant 0 : index
      %c0_19 = arith.constant 0 : index
      %31 = vector.load %arg3[%c0_17, %c0_18, %c0_19] : memref<1x8x1xf32, #tpu.memory_space<vmem>>, vector<1x8x1xf32>
      %32 = vector.shape_cast %31 : vector<1x8x1xf32> to vector<8x1xf32>
      %33 = vector.broadcast %32 : vector<8x1xf32> to vector<8x128xf32>
      %34 = arith.mulf %33, %29 : vector<8x128xf32>
      %35 = arith.addf %30, %34 : vector<8x128xf32>
      %c0_20 = arith.constant 0 : index
      %c0_21 = arith.constant 0 : index
      %36 = vector.load %arg7[%c0_20, %c0_21] : memref<8x128xf32, #tpu.memory_space<vmem>>, vector<8x128xf32>
      tpu.vector_store %arg7[%c0_20, %c0_21], %35 {strides = array<i32>} : memref<8x128xf32, #tpu.memory_space<vmem>>, vector<8x128xf32>,
    } else {
    }
    return
  }
  func.func @transform_0(%arg0: i32, %arg1: i32, %arg2: memref<2x4xi32, #tpu.memory_space<smem>>) -> (i32, i32, i32) {
    %c0_i32 = arith.constant 0 : i32
    %c0_i32_0 = arith.constant 0 : i32
    return %arg1, %arg0, %c0_i32 : i32, i32, i32
  }
  func.func @transform_1(%arg0: i32, %arg1: i32, %arg2: memref<2x4xi32, #tpu.memory_space<smem>>) -> (i32, i32) {
    %c0_i32 = arith.constant 0 : i32
    %c0_i32_0 = arith.constant 0 : i32
    return %arg0, %c0_i32 : i32, i32
  }
  func.func @transform_2(%arg0: i32, %arg1: i32, %arg2: memref<2x4xi32, #tpu.memory_space<smem>>) -> (i32, i32, i32) {
    %c0_i32 = arith.constant 0 : i32
    %c0_i32_0 = arith.constant 0 : i32
    %c0_i32_1 = arith.constant 0 : i32
    return %arg1, %c0_i32, %c0_i32_0 : i32, i32, i32
  }
  func.func @transform_3(%arg0: i32, %arg1: i32, %arg2: memref<2x4xi32, #tpu.memory_space<smem>>) -> (i32, i32, i32) {
    %c0_i32 = arith.constant 0 : i32
    %c0_i32_0 = arith.constant 0 : i32
    %c0_i32_1 = arith.constant 0 : i32
    return %arg1, %c0_i32, %c0_i32_0 : i32, i32, i32
  }
  func.func @transform_4(%arg0: i32, %arg1: i32, %arg2: memref<2x4xi32, #tpu.memory_space<smem>>) -> (i32, i32) {
    %c0_i32 = arith.constant 0 : i32
    %c0_i32_0 = arith.constant 0 : i32
    return %arg0, %c0_i32 : i32, i32
  }
}

</mosaic_0001>

<bundles_post_ra>
// kernel: tpu_custom_call.1
= control target key start
LH: loop header
LB: loop body
LE: loop exit
PB: predicated region body
PF: predicated region fallthrough
CT: control target
= control target key end

     0   :  { %s1445_s0 = inlined_call_operand.vmem [shape: s32[2,4], index: 0, kind: input, shape index: {}]   ;;  %s1446_s1 = inlined_call_operand.vmem [shape: f32[4,16,1], index: 1, kind: input, shape index: {}]   ;;  %s1447_s2 = inlined_call_operand.vmem [shape: bf16[16,128], index: 2, kind: input, shape index: {}]   ;;  %s1448_s3 = inlined_call_operand.hbm [shape: bf16[4,128,128], index: 3, kind: input, shape index: {}]   ;;  %s1449_s4 = inlined_call_operand.hbm [shape: bf16[4,128,128], index: 4, kind: input, shape index: {}]   ;;  %s1450_s5 = inlined_call_operand.hbm [shape: f32[16,128], index: 5, kind: output, shape index: {}]  }
   0x1   :  { %1457 = sst [smem:[#allocation21_spill]] %s1448_s3  ;;  %s10_s20 = sshll.u32 %s1445_s0, 4  ;;  %s11_s20 = int_to_ptr.vmem [resolvable:$true] %s10_s20 }
   0x2   :  { %s951_s21 = scalar_lea.vmem %s11_s20, 32  ;;  %p956_p1 = scmp.lt.s32.totalorder %s11_s20, %s11_s20 }
   0x3   :  { %p952_p0 = scmp.ne.s32.totalorder %s11_s20, %s951_s21  ;;  %p957_p2 = scmp.lt.s32.totalorder %s951_s21, %s951_s21 }
   0x5   :  { %p958_p3 = por %p957_p2, %p956_p1 }
   0x7   :  { %p959_p4 = pnand %p958_p3, %p952_p0 }
   0x9   :  { %962 = shalt.err (!%p959_p4)  }
   0xa   :  { %s1147_s22 = smov [#allocation3]  }
   0xb   :  { %13 = dma.vmem_to_smem %s11_s20, 32, %s1147_s22, [#allocation2] }
   0xc   :  { %1089 = dma.done.wait [#allocation2], 32 }
   0xd   :  { %1090 = vsyncadd [#allocation2], 4294967264 }
   0xe   :  { %15 = sfence }
   0xf   :  { %16 = vsyncpa [#allocation5], 0 }
  0x10   :  { %18 = vsyncpa [#allocation5 + $0x1], 0 }
  0x11   :  { %19 = vsyncpa [#allocation8], 0 }
  0x12   :  { %21 = vsyncpa [#allocation8 + $0x1], 0 }
  0x13   :  { %22 = vsyncpa [#allocation6], 0 }
  0x14   :  { %24 = vsyncpa [#allocation6 + $0x1], 0  ;;  %s1190_s0 = smov 0   ;;  %s1192_s23 = smov 0  }
  0x15   :  { %s1194_s24 = smov 0   ;;  %s1196_s25 = smov 0  }
  0x16   :  { %s1198_s26 = smov 0   ;;  %s1200_s27 = smov 0  }
  0x17   :  { %s1202_s28 = smov 0   ;;  %s1204_s29 = smov 0  }
  0x18   :  { %s1206_s30 = smov 0   ;;  %s1208_s6 = smov 0  }
  0x19   :  { %s1210_s7 = smov 0  }
  0x1a LB: > { %1458 = sst [smem:[#allocation14_spill]] %s1125_s27  ;;  %s718_s8 = sadd.s32 4294967295, %s1145_s7   ;;  %s1145_s7 = sphi %s1210_s7, %s30_s7   ;;  %s1141_s6 = sphi %s1208_s6, %s1479_s6   ;;  %s1137_s30 = sphi %s1206_s30, %s1478_s30   ;;  %s1133_s29 = sphi %s1204_s29, %s1477_s29   ;;  %s1129_s28 = sphi %s1202_s28, %s1476_s28   ;;  %s1125_s27 = sphi %s1200_s27, %s1475_s27   ;;  %s1121_s26 = sphi %s1198_s26, %s1484_s26   ;;  %s1117_s25 = sphi %s1196_s25, %s1483_s25   ;;  %s1113_s24 = sphi %s1194_s24, %s1482_s24   ;;  %s1109_s23 = sphi %s1192_s23, %s1481_s23   ;;  %s1105_s0 = sphi %s1190_s0, %s1480_s0  }
  0x1b   : > { %1459 = sst [smem:[#allocation15_spill]] %s1137_s30  ;;  %s719_s9 = sadd.s32 4294967294, %s1145_s7  }
  0x1c   : > { %1460 = sst [smem:[#allocation16_spill]] %s1141_s6  ;;  %s39_s10 = sadd.s32 1, %s1137_s30 }
  0x1d   : > { %s42_s11 = sadd.s32 1, %s1141_s6  ;;  %p40_p5 = scmp.ge.s32.totalorder %s39_s10, 4 }
  0x1e   : > { %s103_s12 = sadd.s32 1, %s1125_s27  ;;  %p110_p6 = scmp.ne.s32.totalorder %s1125_s27, %s1121_s26 }
  0x1f   : > { %p111_p7 = scmp.eq.s32.totalorder %s1145_s7, 0  ;;  %s1486_s10 = smov (%p40_p5, %s39_s10), 0 }
  0x20   : > { %1461 = sst [smem:[#allocation17_spill]] %s1486_s10  ;;  %s1488_s11 = smov (!%p40_p5, %s42_s11), %s1141_s6 }
  0x21   : > { %s100_s13 = ssub.s32 %s1137_s30, %s1486_s10  ;;  %p1256_p8 = por %p111_p7, %p110_p6 }
  0x22   : > { %p44_p9 = scmp.ge.s32.totalorder %s1488_s11, 2  ;;  %p101_p10 = scmp.eq.s32.totalorder %s100_s13, 0 }
  0x23   : > { %p116_p11 = scmp.ne.s32.totalorder %s1121_s26, %s1117_s25  ;;  %p117_p12 = scmp.eq.s32.totalorder %s718_s8, 0 }
  0x24   : > { %s1490_s11 = smov (%p44_p9, %s1488_s11), 0  ;;  %s155_s18 = sadd.s32 1, %s1113_s24 }
  0x25   : > { %1463 = sst [smem:[#allocation18_spill]] %s1490_s11  ;;  %p1266_p13 = por %p117_p12, %p116_p11 }
  0x26   : > { %s1264_s15 = scalar_select %p101_p10, %s1125_s27, %s103_s12  }
  0x27   : > { %s152_s17 = ssub.s32 %s1141_s6, %s1490_s11  ;;  %p165_p1 = scmp.ne.s32.totalorder %s1113_s24, %s1109_s23 }
  0x28   : > { %1464 = sst [smem:[#allocation19_spill]] %s1264_s15  ;;  %p153_p0 = scmp.eq.s32.totalorder %s152_s17, 0 }
  0x29   : > { %p166_p2 = scmp.eq.s32.totalorder %s718_s8, 7  ;;  %p171_p4 = scmp.ne.s32.totalorder %s1109_s23, %s1105_s0 }
  0x2a   : > { %s1276_s19 = scalar_select %p153_p0, %s1113_s24, %s155_s18  }
  0x2b   : > { %p1278_p3 = por %p166_p2, %p165_p1  ;;  %p172_p5 = scmp.eq.s32.totalorder %s719_s9, 7 }
  0x2c   : > { %1466 = sst [smem:[#allocation20_spill]] %s1276_s19  ;;  %p835_p6 = scmp.lt.s32.totalorder %s1145_s7, 8 }
  0x2d   : > { %s1286_s21 = sand.u32 1, %s1125_s27   ;;  %p1288_p7 = por %p172_p5, %p171_p4 }
  0x2e   : > { %s1454_s25 = sshll.u32 %s1286_s21, 6  ;;  %s758_s8 = sshll.u32 %s1137_s30, 10 }
  0x2f   : > { %s1469_s3 = sld [smem:[#allocation21_spill]]  ;;  %s214_s18 = scalar_lea.vmem [#allocation4], %s1454_s25 }
  0x30   : > { %s221_s11 = sshll.u32 %s214_s18, 4  ;;  %p1301_p9 = pnand %p835_p6, %p1256_p8  ;;  %s222_s11 = int_to_ptr.vmem [resolvable:$true] %s221_s11 }
  0x31   : > { %s211_s10 = scalar_lea.sflag [#allocation5], %s1286_s21  ;;  %s976_s6 = scalar_lea.vmem %s222_s11, 1024 }
  0x32   : > { %p965_p10 = pneg %p1301_p9  ;;  %p977_p11 = scmp.ne.s32.totalorder %s222_s11, %s976_s6 }
  0x33   : > { %s1148_s12 = smov [#allocation4]  }
  0x34   : > { %p979_p12 = pnand %p977_p11, %p965_p10  ;;  %s981_s13 = sshll.u32 %s1148_s12, 4  ;;  %s982_s13 = int_to_ptr.vmem [resolvable:$false] %s981_s13 }
  0x35   : > { %s220_s17 = scalar_lea.hbm %s1469_s3, %s758_s8  ;;  %s983_s14 = scalar_lea.vmem %s982_s13, 2048 }
  0x36   : > { %p980_p0 = pneg %p979_p12  ;;  %p984_p8 = scmp.lt.s32.totalorder %s222_s11, %s982_s13 }
  0x37   : > { %p985_p1 = scmp.lt.s32.totalorder %s983_s14, %s976_s6 }
  0x39   : > { %p986_p2 = por %p985_p1, %p984_p8 }
  0x3b   : > { %p987_p4 = pnand %p986_p2, %p980_p0 }
  0x3d   : > { %990 = shalt.err (!%p987_p4)
}
  0x3e   : > { %s1149_s18 = smov 64   ;;  %s1150_s25 = smov 4  }
  0x3f   : > { %827 = dma.hbm_to_vmem [thread:$0]  (!%p1301_p9), %s220_s17, 1024, %s222_s11, %s211_s10, %s1149_s18, %s1149_s18, %s1150_s25  }
  0x40   : > { %p728_p5 = scmp.ge.s32.totalorder %s1145_s7, 1  ;;  %p250_p6 = scmp.lt.s32.totalorder %s1145_s7, 9 }
  0x41   : > { %s241_s14 = scalar_lea.hbm %s1449_s4, %s758_s8  ;;  %s1472_s3 = sshll.u32 %s1286_s21, 6 }
  0x42   : > { %p1315_p11 = pnand %p728_p5, %p250_p6  ;;  %s235_s30 = scalar_lea.vmem [#allocation7], %s1472_s3 }
  0x43   : > { %s242_s15 = sshll.u32 %s235_s30, 4  ;;  %s232_s27 = scalar_lea.sflag [#allocation8], %s1286_s21  ;;  %s243_s15 = int_to_ptr.vmem [resolvable:$true] %s242_s15 }
  0x44   : > { %s1004_s19 = scalar_lea.vmem %s243_s15, 1024  ;;  %s1151_s10 = smov [#allocation7]  }
  0x45   : > { %p1005_p12 = scmp.ne.s32.totalorder %s243_s15, %s1004_s19  ;;  %s1009_s11 = sshll.u32 %s1151_s10, 4  ;;  %s1010_s11 = int_to_ptr.vmem [resolvable:$false] %s1009_s11 }
  0x46   : > { %s1011_s17 = scalar_lea.vmem %s1010_s11, 2048  ;;  %p1012_p1 = scmp.lt.s32.totalorder %s243_s15, %s1010_s11 }
  0x47   : > { %p1007_p0 = pnand %p1005_p12, %p965_p10  ;;  %p1013_p2 = scmp.lt.s32.totalorder %s1011_s17, %s1004_s19 }
  0x49   : > { %p1008_p8 = pneg %p1007_p0  ;;  %p1014_p4 = por %p1013_p2, %p1012_p1 }
  0x4b   : > { %p1015_p5 = pnand %p1014_p4, %p1008_p8 }
  0x4d   : > { %1018 = shalt.err (!%p1015_p5)
}
  0x4e   : > { %830 = dma.hbm_to_vmem [thread:$0]  (!%p1301_p9), %s241_s14, 1024, %s243_s15, %s232_s27, %s1149_s18, %s1149_s18, %s1150_s25  }
  0x4f   : > { %254 = sbr.rel (%p1315_p11) target bundleno = 598 (0x256), region = 36  ;;  %s256_s3 = sand.u32 (!%p1315_p11), 1, %s1121_s26  }
  0x50   : > { %s729_s30 = sshll.u32 (!%p1315_p11), %s256_s3, 6  ;;  %s257_s21 = scalar_lea.sflag (!%p1315_p11), [#allocation5], %s256_s3 }
  0x51   : > { %s1333_s8 = scalar_lea.vmem (!%p1315_p11), [#allocation4], %s729_s30 }
  0x54   : > { %1092 = dma.done.wait (%p1266_p13), %s257_s21, 1024  }
  0x55   : > { %1094 = vsyncadd (%p1266_p13), %s257_s21, 4294966272  ;;  %s266_s19 = scalar_lea.sflag [#allocation8], %s256_s3  ;;  %s1339_s6 = scalar_lea.vmem [#allocation7], %s729_s30 }
  0x56   : > { %1096 = dma.done.wait (%p1266_p13), %s266_s19, 1024  }
  0x57   : > { %1098 = vsyncadd (%p1266_p13), %s266_s19, 4294966272  ;;  %s308_s27 = sand.u32 1, %s1109_s23   ;;  %p311_p9 = scmp.lt.s32.totalorder %s1129_s28, 3 }
  0x58   : > { %s731_s15 = sshll.u32 %s308_s27, 3  ;;  %p313_p10 = scmp.lt.s32.totalorder %s1133_s29, 1 }
  0x59   : > { %s312_s25 = scalar_select %p311_p9, %s1129_s28, 3 }
  0x5a   : > { %s314_s9 = scalar_select %p313_p10, %s1133_s29, 1 }
  0x5b   : > { %s732_s18 = sshll.u32 %s312_s25, 1  ;;  %s1362_s21 = scalar_lea.vmem [#allocation9], %s731_s15 }
  0x5c   : > { %s316_s12 = sadd.s32 %s732_s18, %s314_s9  ;;  %s734_s13 = sshll.u32 %s314_s9, 2 }
  0x5d   : > { %s733_s14 = sshll.u32 %s316_s12, 3  ;;  %s1355_s11 = scalar_lea.vmem %s1447_s2, %s734_s13 }
  0x5e   : > { %s1360_s30 = scalar_lea.vmem %s1446_s1, %s733_s14  ;;  %p735_p13 = scmp.ne.s32.totalorder %s1129_s28, 0 }
  0x60   : > { %327 = sbr.rel (%p735_p13) target bundleno = 103 (0x67), region = 48 }
  0x65   : > { %v1152_v0 = vmov 0.0  }
  0x66   : > { %328 = vst [vmem:[%s1362_s21] sm:$0xff] %v1152_v0 }
  0x67 PF: > { %s329_s19 = sshra.s32 %s1129_s28, 7  ;;  %s334_s25 = sand.u32 127, %s1129_s28 }
  0x68   : > { %s331_s9 = sadd.s32 %s1133_s29, %s329_s19 }
  0x69   : > { %s736_s18 = sshll.u32 %s331_s9, 7 }
  0x6a   : > { %s335_s12 = sadd.s32 %s736_s18, %s334_s25 }
  0x6b   : > { %s336_s13 = sld [smem:[#allocation3 + %s335_s12]] }
  0x71   : > { %p737_p6 = scmp.eq.s32.totalorder %s336_s13, 0 }
  0x73   : > { %340 = sbr.rel (%p737_p6) target bundleno = 575 (0x23f), region = 52 }
  0x78   : > { %v933_v1 = vld [vmem:[%s1333_s8 + $0x38] sm:$0xff]   ;;  %v1153_v2 = vmov 0.0   ;;  %v934_v3 = vld [vmem:[%s1333_s8 + $0x30] sm:$0xff]   ;;  %vm1154_vm0 = vmmov 0   ;;  %v935_v4 = vld [vmem:[%s1333_s8 + $0x28] sm:$0xff]   ;;  %v1155_v20 = vmov 0  }
  0x79   : > { %778 = vmatprep.subr.bf16.mxu0 %v1153_v2  ;;  %798 = vmatprep.subr.bf16.mxu1 %v1153_v2  ;;  %v936_v5 = vld [vmem:[%s1333_s8 + $0x20] sm:$0xff]   ;;  %v937_v6 = vld [vmem:[%s1333_s8 + $0x18] sm:$0xff]   ;;  %v938_v7 = vld [vmem:[%s1333_s8 + $0x10] sm:$0xff]  }
  0x7a   : > { %779 = vmatpush3.bf16.msra.mxu0 %v933_v1  ;;  %794 = vmatprep.mubr.msk.bf16.mxu0 %vm1154_vm0, %v1153_v2  ;;  %v939_v8 = vld [vmem:[%s1333_s8 + $0x8] sm:$0xff]   ;;  %v940_v9 = vld [vmem:[%s1333_s8] sm:$0xff]   ;;  %v941_v11 = vld [vmem:[%s1339_s6 + $0x38] sm:$0xff]  }
  0x7b   : > { %780 = vmatprep.subr.bf16.mxu0 %v1153_v2  ;;  %814 = vmatprep.mubr.msk.bf16.mxu1 %vm1154_vm0, %v1153_v2  ;;  %v341_v10 = vld [vmem:[%s1355_s11] sm:$0xf]  ;;  %v942_v12 = vld [vmem:[%s1339_s6 + $0x30] sm:$0xff]   ;;  %v943_v13 = vld [vmem:[%s1339_s6 + $0x28] sm:$0xff]  }
  0x7c   : > { %799 = vmatpush3.bf16.msra.mxu1 %v941_v11  ;;  %v944_v14 = vld [vmem:[%s1339_s6 + $0x20] sm:$0xff]   ;;  %v945_v15 = vld [vmem:[%s1339_s6 + $0x18] sm:$0xff]   ;;  %v946_v16 = vld [vmem:[%s1339_s6 + $0x10] sm:$0xff]   ;;  %932 = vset.pattern.permute.xlu0 %v1155_v20 }
  0x7d   : > { %800 = vmatprep.subr.bf16.mxu1 %v1153_v2  ;;  %v947_v17 = vld [vmem:[%s1339_s6 + $0x8] sm:$0xff]   ;;  %v948_v18 = vld [vmem:[%s1339_s6] sm:$0xff]  }
  0x7e   : > { %781 = vmatpush3.bf16.msra.mxu0 %v934_v3  ;;  %v561_v19 = vld [vmem:[%s1360_s30] sm:$0xff] }
  0x7f   : > { %782 = vmatprep.subr.bf16.mxu0 %v1153_v2  ;;  %564 = vperm.xlu0 %932, %v561_v19   ;;  %v560_v37 = vld [vmem:[%s1362_s21] sm:$0xff] }
  0x80   : > { %801 = vmatpush3.bf16.msra.mxu1 %v942_v12 }
  0x81   : > { %802 = vmatprep.subr.bf16.mxu1 %v1153_v2 }
  0x82   : > { %783 = vmatpush3.bf16.msra.mxu0 %v935_v4 }
  0x83   : > { %784 = vmatprep.subr.bf16.mxu0 %v1153_v2 }
  0x84   : > { %803 = vmatpush3.bf16.msra.mxu1 %v943_v13 }
  0x85   : > { %804 = vmatprep.subr.bf16.mxu1 %v1153_v2 }
  0x86   : > { %785 = vmatpush3.bf16.msra.mxu0 %v936_v5 }
  0x87   : > { %786 = vmatprep.subr.bf16.mxu0 %v1153_v2 }
  0x88   : > { %805 = vmatpush3.bf16.msra.mxu1 %v944_v14 }
  0x89   : > { %806 = vmatprep.subr.bf16.mxu1 %v1153_v2 }
  0x8a   : > { %787 = vmatpush3.bf16.msra.mxu0 %v937_v6 }
  0x8b   : > { %788 = vmatprep.subr.bf16.mxu0 %v1153_v2 }
  0x8c   : > { %807 = vmatpush3.bf16.msra.mxu1 %v945_v15 }
  0x8d   : > { %808 = vmatprep.subr.bf16.mxu1 %v1153_v2 }
  0x8e   : > { %789 = vmatpush3.bf16.msra.mxu0 %v938_v7 }
  0x8f   : > { %790 = vmatprep.subr.bf16.mxu0 %v1153_v2 }
  0x90   : > { %809 = vmatpush3.bf16.msra.mxu1 %v946_v16 }
  0x91   : > { %810 = vmatprep.subr.bf16.mxu1 %v1153_v2 }
  0x92   : > { %791 = vmatpush3.bf16.msra.mxu0 %v939_v8 }
  0x93   : > { %792 = vmatprep.subr.bf16.mxu0 %v1153_v2 }
  0x94   : > { %811 = vmatpush3.bf16.msra.mxu1 %v947_v17 }
  0x95   : > { %812 = vmatprep.subr.bf16.mxu1 %v1153_v2 }
  0x96   : > { %793 = vmatpush3.bf16.msra.mxu0 %v940_v9 }
  0x98   : > { %813 = vmatpush3.bf16.msra.mxu1 %v948_v18 }
  0x99   : > { %795 = vmatmul.mubr.bf16.vlgmr.msra.gmra.mxu0 %v341_v10 }
  0xfa   : > { %v565_v35 = vpop.permute.xlu0 %564 }
 0x159   : > { %v440_v21 = vpop.f32.mrf.mxu0 }
 0x15a   : > { %v447_v22 = vmul.f32 0.044715, %v440_v21  ;;  %v446_v31 = vmul.f32 0.5, %v440_v21 }
 0x15b   : > { %v796_v23 = vpop.f32.mrf.mxu0 }
 0x15c   : > { %v448_v24 = vmul.f32 %v447_v22, %v440_v21 }
 0x15d   : > { %v443_v25 = vpop.f32.mrf.mxu0 }
 0x15e   : > { %v449_v26 = vmul.f32 %v448_v24, %v440_v21 }
 0x15f   : > { %v797_v27 = vpop.f32.mrf.mxu0 }
 0x160   : > { %v450_v28 = vadd.f32 %v449_v26, %v440_v21 }
 0x162   : > { %v451_v29 = vmul.f32 0.7978846, %v450_v28 }
 0x164   : > { %949 = vtanh.f32 %v451_v29 }
 0x171   : > { %v950_v30 = vpop.eup %949 }
 0x172   : > { %v453_v32 = vadd.f32 1.0, %v950_v30 }
 0x174   : > { %v454_v33 = vmul.f32 %v453_v32, %v446_v31 }
 0x176   : > { %v455_v34 = vpack.c.bf16 %v454_v33, %v454_v33 }
 0x178   : > { %815 = vmatmul.mubr.bf16.vlgmr.msra.gmra.mxu1 %v455_v34 }
 0x238   : > { %v554_v36 = vpop.f32.mrf.mxu1 }
 0x239   : > { %v567_v38 = vmul.f32 %v565_v35, %v554_v36 }
 0x23a   : > { %v816_v39 = vpop.f32.mrf.mxu1 }
 0x23b   : > { %v568_v40 = vadd.f32 %v567_v38, %v560_v37 }
 0x23c   : > { %v557_v41 = vpop.f32.mrf.mxu1 }
 0x23d   : > { %569 = vst [vmem:[%s1362_s21] sm:$0xff] %v568_v40 }
 0x23e   : > { %v817_v42 = vpop.f32.mrf.mxu1 }
 0x23f PF: > { %s755_s28 = sshll.u32 %s1133_s29, 7  ;;  %s584_s14 = sshll.u32 %s1362_s21, 4  ;;  %s585_s14 = int_to_ptr.vmem [resolvable:$true] %s584_s14 }
 0x240   : > { %s582_s15 = scalar_lea.hbm %s1450_s5, %s755_s28  ;;  %s571_s10 = scalar_lea.sflag [#allocation6], %s308_s27 }
 0x241   : > { %s1019_s16 = scalar_lea.vmem %s585_s14, 128  ;;  %s1156_s11 = smov [#allocation9]  }
 0x242   : > { %p1020_p11 = scmp.ne.s32.totalorder %s585_s14, %s1019_s16  ;;  %s1023_s17 = sshll.u32 %s1156_s11, 4  ;;  %s1024_s17 = int_to_ptr.vmem [resolvable:$false] %s1023_s17 }
 0x243   : > { %s1025_s3 = scalar_lea.vmem %s1024_s17, 256  ;;  %p1026_p8 = scmp.lt.s32.totalorder %s585_s14, %s1024_s17 }
 0x244   : > { %p1021_p12 = pnand %p1020_p11, %p1278_p3  ;;  %p1027_p1 = scmp.lt.s32.totalorder %s1025_s3, %s1019_s16 }
 0x246   : > { %p1022_p0 = pneg %p1021_p12  ;;  %p1028_p2 = por %p1027_p1, %p1026_p8 }
 0x248   : > { %p1029_p4 = pnand %p1028_p2, %p1022_p0 }
 0x24a   : > { %1032 = shalt.err (!%p1029_p4)
}
 0x24b   : > { %s1033_s29 = scalar_lea.hbm %s582_s15, 128  ;;  %s1037_s21 = scalar_lea.hbm %s1450_s5, 256 }
 0x24c   : > { %p1034_p5 = scmp.ne.s32.totalorder %s582_s15, %s1033_s29  ;;  %p1038_p13 = scmp.lt.s32.totalorder %s582_s15, %s1450_s5 }
 0x24d   : > { %p1039_p6 = scmp.lt.s32.totalorder %s1037_s21, %s1033_s29 }
 0x24e   : > { %p1035_p9 = pnand %p1034_p5, %p1278_p3 }
 0x24f   : > { %p1040_p11 = por %p1039_p6, %p1038_p13 }
 0x250   : > { %p1036_p10 = pneg %p1035_p9 }
 0x252   : > { %p1041_p12 = pnand %p1040_p11, %p1036_p10 }
 0x254   : > { %1044 = shalt.err (!%p1041_p12)
}
 0x255   : > { %822 = dma.vmem_to_hbm [thread:$0]  (%p1278_p3), %s585_s14, 128, %s582_s15, %s571_s10  }
 0x256 PF: > { %p836_p0 = scmp.ge.s32.totalorder %s1145_s7, 2  ;;  %s596_s9 = sand.u32 1, %s1105_s0  }
 0x257   : > { %s597_s18 = scalar_lea.sflag [#allocation6], %s596_s9 }
 0x258   : > { %p832_p8 = pnand %p836_p0, %p1288_p7 }
 0x25a   : > { %p833_p1 = pneg %p832_p8 }
 0x25c   : > { %1100 = dma.done.wait (%p833_p1), %s597_s18, 128  }
 0x25d   : > { %1102 = vsyncadd (%p833_p1), %s597_s18, 4294967168  ;;  %s30_s7 = sadd.s32 1, %s1145_s7   ;;  %s1473_s12 = sld [smem:[#allocation20_spill]] }
 0x25e   : > { %p27_p2 = scmp.ge.s32.totalorder %s30_s7, 10   ;;  %s1474_s20 = sld [smem:[#allocation14_spill]] }
 0x25f   : > { %s1475_s27 = sld [smem:[#allocation19_spill]]  ;;  %s1480_s0 = smov %s1109_s23 }
 0x260   : > { %s1476_s28 = sld [smem:[#allocation15_spill]]  ;;  %s1481_s23 = smov %s1113_s24 }
 0x261   : > { %s1477_s29 = sld [smem:[#allocation16_spill]]  ;;  %s1483_s25 = smov %s1121_s26 }
 0x262   : > { %s1478_s30 = sld [smem:[#allocation17_spill]]  ;;  %29 = sbr.rel (!%p27_p2) target bundleno = 26 (0x1a), region = 108 }
 0x263   : > { %s1479_s6 = sld [smem:[#allocation18_spill]]  ;;  %s1482_s24 = smov %s1473_s12 }
 0x264   : > { %s1484_s26 = smov %s1474_s20 }
 0x267   :  { %602 = vsyncpa [#allocation5], 1 }
 0x268   :  { %604 = vsyncpa [#allocation5 + $0x1], 1 }
 0x269   :  { %605 = vsyncpa [#allocation8], 1 }
 0x26a   :  { %607 = vsyncpa [#allocation8 + $0x1], 1 }
 0x26b   :  { %608 = vsyncpa [#allocation6], 1 }
 0x26c   :  { %610 = vsyncpa [#allocation6 + $0x1], 1 }

</bundles_post_ra>
